<compile_context>
chip_gen: v7x
topology: tpu7x:2x2x1
jax: 0.10.0
libtpu: 0.0.40
codegen_flags: <defaults>
</compile_context>

<pallas_src>
import functools

import jax
import jax.numpy as jnp
from jax.experimental import pallas as pl
from jax.experimental.pallas import tpu as pltpu


def attention_kernel(q_ref, k_ref, v_ref, wq_ref, wk_ref, wv_ref,
                     wp_ref, bp_ref, o_ref, acc_ref, *, scale):
    """One (batch, head) grid step.

    q_ref/k_ref/v_ref : (1, S, D)   full-sequence activations for this batch
    wq/wk/wv_ref      : (1, D, Dh)  per-head projection weight slice
    wp_ref            : (1, Dh, D)  per-head slice of the output projection
    bp_ref            : (1, D)      output projection bias
    o_ref             : (1, S, D)   output block (resident across the head axis)
    acc_ref           : (S, D) f32  VMEM accumulator for sum over heads
    """
    h = pl.program_id(1)

    @pl.when(h == 0)
    def _init():
        acc_ref[...] = jnp.zeros_like(acc_ref)

    xq = q_ref[0]                     # (S, D)
    xk = k_ref[0]
    xv = v_ref[0]
    wq = wq_ref[0]                    # (D, Dh)
    wk = wk_ref[0]
    wv = wv_ref[0]
    wp = wp_ref[0]                    # (Dh, D)

    # Per-head Q/K/V projections (MXU matmuls, f32 accumulation).
    qh = jnp.dot(xq, wq, preferred_element_type=jnp.float32)      # (S, Dh)
    kh = jnp.dot(xk, wk, preferred_element_type=jnp.float32)      # (S, Dh)
    vh = jnp.dot(xv, wv, preferred_element_type=jnp.float32)      # (S, Dh)

    # Scaled dot-product attention with numerically-stable softmax.
    s = jnp.dot(qh, kh.T, preferred_element_type=jnp.float32) * scale   # (S, S)
    m = jnp.max(s, axis=-1, keepdims=True)
    p = jnp.exp(s - m)
    p = p / jnp.sum(p, axis=-1, keepdims=True)

    yh = jnp.dot(p, vh, preferred_element_type=jnp.float32)       # (S, Dh)

    # Output projection: the per-head contribution y_h @ W_proj[h*Dh:(h+1)*Dh, :]
    # is accumulated across heads (equivalent to concat-then-matmul).
    acc_ref[...] += jnp.dot(yh, wp, preferred_element_type=jnp.float32)  # (S, D)

    @pl.when(h == pl.num_programs(1) - 1)
    def _finalize():
        o_ref[0] = (acc_ref[...] + bp_ref[...]).astype(o_ref.dtype)


def attention_pallas(q, k, v, wq, wk, wv, wp, bp, *, num_heads):
    """q, k, v: (B, S, D).  wq/wk/wv/wp: (D, D) in (in, out) layout.  bp: (D,)."""
    B, S, D = q.shape
    assert D % num_heads == 0
    Dh = D // num_heads
    scale = float(Dh) ** -0.5

    # Host-side re-layout so each grid step sees exactly its head's weights.
    wq_h = wq.reshape(D, num_heads, Dh).transpose(1, 0, 2)   # (H, D, Dh)
    wk_h = wk.reshape(D, num_heads, Dh).transpose(1, 0, 2)   # (H, D, Dh)
    wv_h = wv.reshape(D, num_heads, Dh).transpose(1, 0, 2)   # (H, D, Dh)
    wp_h = wp.reshape(num_heads, Dh, D)                      # (H, Dh, D)
    bp_2d = bp.reshape(1, D)

    kernel = functools.partial(attention_kernel, scale=scale)

    return pl.pallas_call(
        kernel,
        out_shape=jax.ShapeDtypeStruct((B, S, D), q.dtype),
        grid_spec=pltpu.PrefetchScalarGridSpec(
            num_scalar_prefetch=0,
            grid=(B, num_heads),                          # heads = reduction, last
            in_specs=[
                pl.BlockSpec((1, S, D), lambda b, h: (b, 0, 0)),   # q
                pl.BlockSpec((1, S, D), lambda b, h: (b, 0, 0)),   # k
                pl.BlockSpec((1, S, D), lambda b, h: (b, 0, 0)),   # v
                pl.BlockSpec((1, D, Dh), lambda b, h: (h, 0, 0)),  # wq slice
                pl.BlockSpec((1, D, Dh), lambda b, h: (h, 0, 0)),  # wk slice
                pl.BlockSpec((1, D, Dh), lambda b, h: (h, 0, 0)),  # wv slice
                pl.BlockSpec((1, Dh, D), lambda b, h: (h, 0, 0)),  # proj slice
                pl.BlockSpec((1, D), lambda b, h: (0, 0)),         # proj bias
            ],
            out_specs=pl.BlockSpec((1, S, D), lambda b, h: (b, 0, 0)),
            scratch_shapes=[pltpu.VMEM((S, D), jnp.float32)],
        ),
        compiler_params=pltpu.CompilerParams(
            dimension_semantics=("parallel", "arbitrary")),
    )(q, k, v, wq_h, wk_h, wv_h, wp_h, bp_2d)


def attention_reference(q, k, v, wq, wk, wv, wp, bp, *, num_heads):
    """Pure-JAX mirror of the PyTorch forward (for validation)."""
    B, S, D = q.shape
    Dh = D // num_heads
    scale = float(Dh) ** -0.5

    def to_heads(x):
        return x.reshape(B, S, num_heads, Dh).transpose(0, 2, 1, 3)  # (B,H,S,Dh)

    qh = to_heads(q @ wq)
    kh = to_heads(k @ wk)
    vh = to_heads(v @ wv)
    attn = jnp.einsum('bhqd,bhkd->bhqk', qh, kh) * scale
    attn = jax.nn.softmax(attn, axis=-1)
    y = jnp.einsum('bhqk,bhkd->bhqd', attn, vh)
    y = y.transpose(0, 2, 1, 3).reshape(B, S, D)
    return y @ wp + bp


if __name__ == "__main__":
    # Small deterministic problem consistent with the module:
    # batch=2, seq=8, dim=32, num_heads=4 -> head_dim=8.
    B, S, D, H = 2, 8, 32, 4

    key = jax.random.PRNGKey(0)
    ks = jax.random.split(key, 8)

    q = jax.random.normal(ks[0], (B, S, D), jnp.float32)
    k = jax.random.normal(ks[1], (B, S, D), jnp.float32)
    v = jax.random.normal(ks[2], (B, S, D), jnp.float32)

    # Linear weights in (in, out) layout (== PyTorch weight.T); qkv_bias=False.
    wq = jax.random.normal(ks[3], (D, D), jnp.float32) * (D ** -0.5)
    wk = jax.random.normal(ks[4], (D, D), jnp.float32) * (D ** -0.5)
    wv = jax.random.normal(ks[5], (D, D), jnp.float32) * (D ** -0.5)
    wp = jax.random.normal(ks[6], (D, D), jnp.float32) * (D ** -0.5)
    bp = 0.1 * jax.random.normal(ks[7], (D,), jnp.float32)

    out = attention_pallas(q, k, v, wq, wk, wv, wp, bp, num_heads=H)
    out = jax.block_until_ready(out)

    ref = jax.block_until_ready(
        attention_reference(q, k, v, wq, wk, wv, wp, bp, num_heads=H))

    assert out.shape == (B, S, D), out.shape
    assert jnp.allclose(out, ref, rtol=1e-4, atol=1e-4), \
        float(jnp.max(jnp.abs(out - ref)))

    # TODO(synk): attn_drop / proj_drop with p > 0 (training mode) would need
    # in-kernel PRNG (pltpu.prng_seed / prng_random_bits); at the default
    # p=0.0 (and eval mode) dropout is the identity, which is what's fused here.
    print("KERNEL_OK")
</pallas_src>

<mosaic_0001>
module attributes {stable_mosaic.version = 11 : i64} {
  func.func @attention_kernel(%arg0: i32, %arg1: i32, %arg2: memref<1x8x32xf32, #tpu.memory_space<vmem>>, %arg3: memref<1x8x32xf32, #tpu.memory_space<vmem>>, %arg4: memref<1x8x32xf32, #tpu.memory_space<vmem>>, %arg5: memref<1x32x8xf32, #tpu.memory_space<vmem>>, %arg6: memref<1x32x8xf32, #tpu.memory_space<vmem>>, %arg7: memref<1x32x8xf32, #tpu.memory_space<vmem>>, %arg8: memref<1x8x32xf32, #tpu.memory_space<vmem>>, %arg9: memref<1x32xf32, #tpu.memory_space<vmem>>, %arg10: memref<1x8x32xf32, #tpu.memory_space<vmem>>, %arg11: memref<8x32xf32, #tpu.memory_space<vmem>>) attributes {dimension_semantics = [#tpu.dimension_semantics<parallel>, #tpu.dimension_semantics<arbitrary>], iteration_bounds = array<i64: 2, 4>, scalar_prefetch = 0 : i64, scratch_operands = 1 : i64, tpu.core_type = #tpu.core_type<tc>, window_params = [{transform_indices = @transform_0, window_bounds = array<i64: 1, 8, 32>}, {transform_indices = @transform_1, window_bounds = array<i64: 1, 8, 32>}, {transform_indices = @transform_2, window_bounds = array<i64: 1, 8, 32>}, {transform_indices = @transform_3, window_bounds = array<i64: 1, 32, 8>}, {transform_indices = @transform_4, window_bounds = array<i64: 1, 32, 8>}, {transform_indices = @transform_5, window_bounds = array<i64: 1, 32, 8>}, {transform_indices = @transform_6, window_bounds = array<i64: 1, 8, 32>}, {pipeline_mode = #tpu.pipeline_mode<synchronous>, transform_indices = @transform_7, window_bounds = array<i64: 1, 32>}, {transform_indices = @transform_8, window_bounds = array<i64: 1, 8, 32>}]} {
    %c0_i32 = arith.constant 0 : i32
    %0 = arith.cmpi eq, %arg1, %c0_i32 : i32
    %1 = arith.extui %0 : i1 to i32
    %c0_i32_0 = arith.constant 0 : i32
    %2 = arith.cmpi ne, %1, %c0_i32_0 : i32
    scf.if %2 {
      %cst_34 = arith.constant 0.000000e+00 : f32
      %41 = vector.broadcast %cst_34 : f32 to vector<8x32xf32>
      %c0_35 = arith.constant 0 : index
      %c0_36 = arith.constant 0 : index
      %42 = vector.load %arg11[%c0_35, %c0_36] : memref<8x32xf32, #tpu.memory_space<vmem>>, vector<8x32xf32>
      tpu.vector_store %arg11[%c0_35, %c0_36], %41 {strides = array<i32>} : memref<8x32xf32, #tpu.memory_space<vmem>>, vector<8x32xf32>,
    } else {
    }
    %c0 = arith.constant 0 : index
    %c0_1 = arith.constant 0 : index
    %c0_2 = arith.constant 0 : index
    %3 = vector.load %arg2[%c0, %c0_1, %c0_2] : memref<1x8x32xf32, #tpu.memory_space<vmem>>, vector<1x8x32xf32>
    %4 = vector.shape_cast %3 : vector<1x8x32xf32> to vector<8x32xf32>
    %c0_3 = arith.constant 0 : index
    %c0_4 = arith.constant 0 : index
    %c0_5 = arith.constant 0 : index
    %5 = vector.load %arg3[%c0_3, %c0_4, %c0_5] : memref<1x8x32xf32, #tpu.memory_space<vmem>>, vector<1x8x32xf32>
    %6 = vector.shape_cast %5 : vector<1x8x32xf32> to vector<8x32xf32>
    %c0_6 = arith.constant 0 : index
    %c0_7 = arith.constant 0 : index
    %c0_8 = arith.constant 0 : index
    %7 = vector.load %arg4[%c0_6, %c0_7, %c0_8] : memref<1x8x32xf32, #tpu.memory_space<vmem>>, vector<1x8x32xf32>
    %8 = vector.shape_cast %7 : vector<1x8x32xf32> to vector<8x32xf32>
    %c0_9 = arith.constant 0 : index
    %c0_10 = arith.constant 0 : index
    %c0_11 = arith.constant 0 : index
    %9 = vector.load %arg5[%c0_9, %c0_10, %c0_11] : memref<1x32x8xf32, #tpu.memory_space<vmem>>, vector<1x32x8xf32>
    %10 = vector.shape_cast %9 : vector<1x32x8xf32> to vector<32x8xf32>
    %c0_12 = arith.constant 0 : index
    %c0_13 = arith.constant 0 : index
    %c0_14 = arith.constant 0 : index
    %11 = vector.load %arg6[%c0_12, %c0_13, %c0_14] : memref<1x32x8xf32, #tpu.memory_space<vmem>>, vector<1x32x8xf32>
    %12 = vector.shape_cast %11 : vector<1x32x8xf32> to vector<32x8xf32>
    %c0_15 = arith.constant 0 : index
    %c0_16 = arith.constant 0 : index
    %c0_17 = arith.constant 0 : index
    %13 = vector.load %arg7[%c0_15, %c0_16, %c0_17] : memref<1x32x8xf32, #tpu.memory_space<vmem>>, vector<1x32x8xf32>
    %14 = vector.shape_cast %13 : vector<1x32x8xf32> to vector<32x8xf32>
    %c0_18 = arith.constant 0 : index
    %c0_19 = arith.constant 0 : index
    %c0_20 = arith.constant 0 : index
    %15 = vector.load %arg8[%c0_18, %c0_19, %c0_20] : memref<1x8x32xf32, #tpu.memory_space<vmem>>, vector<1x8x32xf32>
    %16 = vector.shape_cast %15 : vector<1x8x32xf32> to vector<8x32xf32>
    %cst = arith.constant dense<0.000000e+00> : vector<8x8xf32>
    %17 = tpu.matmul %4, %10, %cst {dimension_numbers = #tpu.dot_dimension_numbers<[1], [0], [0], [1], [0, 0, 1, 1], [], []>} : vector<8x32xf32>, vector<32x8xf32>, vector<8x8xf32> -> vector<8x8xf32>
    %cst_21 = arith.constant dense<0.000000e+00> : vector<8x8xf32>
    %18 = tpu.matmul %6, %12, %cst_21 {dimension_numbers = #tpu.dot_dimension_numbers<[1], [0], [0], [1], [0, 0, 1, 1], [], []>} : vector<8x32xf32>, vector<32x8xf32>, vector<8x8xf32> -> vector<8x8xf32>
    %cst_22 = arith.constant dense<0.000000e+00> : vector<8x8xf32>
    %19 = tpu.matmul %8, %14, %cst_22 {dimension_numbers = #tpu.dot_dimension_numbers<[1], [0], [0], [1], [0, 0, 1, 1], [], []>} : vector<8x32xf32>, vector<32x8xf32>, vector<8x8xf32> -> vector<8x8xf32>
    %20 = tpu.transpose %18, [1, 0] : vector<8x8xf32> -> vector<8x8xf32>
    %cst_23 = arith.constant dense<0.000000e+00> : vector<8x8xf32>
    %21 = tpu.matmul %17, %20, %cst_23 {dimension_numbers = #tpu.dot_dimension_numbers<[1], [0], [0], [1], [0, 0, 1, 1], [], []>} : vector<8x8xf32>, vector<8x8xf32>, vector<8x8xf32> -> vector<8x8xf32>
    %cst_24 = arith.constant 0.353553385 : f32
    %22 = vector.broadcast %cst_24 : f32 to vector<8x8xf32>
    %23 = arith.mulf %21, %22 : vector<8x8xf32>
    %cst_25 = arith.constant dense<0xFF800000> : vector<8xf32>
    %24 = vector.multi_reduction <maximumf>, %23, %cst_25 [1] : vector<8x8xf32> to vector<8xf32>
    %25 = vector.shape_cast %24 : vector<8xf32> to vector<8x1xf32>
    %26 = vector.broadcast %25 : vector<8x1xf32> to vector<8x8xf32>
    %27 = arith.subf %23, %26 : vector<8x8xf32>
    %28 = math.exp %27 : vector<8x8xf32>
    %cst_26 = arith.constant dense<0.000000e+00> : vector<8xf32>
    %29 = vector.multi_reduction <add>, %28, %cst_26 [1] : vector<8x8xf32> to vector<8xf32>
    %30 = vector.shape_cast %29 : vector<8xf32> to vector<8x1xf32>
    %31 = vector.broadcast %30 : vector<8x1xf32> to vector<8x8xf32>
    %32 = arith.divf %28, %31 : vector<8x8xf32>
    %cst_27 = arith.constant dense<0.000000e+00> : vector<8x8xf32>
    %33 = tpu.matmul %32, %19, %cst_27 {dimension_numbers = #tpu.dot_dimension_numbers<[1], [0], [0], [1], [0, 0, 1, 1], [], []>} : vector<8x8xf32>, vector<8x8xf32>, vector<8x8xf32> -> vector<8x8xf32>
    %c0_28 = arith.constant 0 : index
    %c0_29 = arith.constant 0 : index
    %34 = vector.load %arg11[%c0_28, %c0_29] : memref<8x32xf32, #tpu.memory_space<vmem>>, vector<8x32xf32>
    %cst_30 = arith.constant dense<0.000000e+00> : vector<8x32xf32>
    %35 = tpu.matmul %33, %16, %cst_30 {dimension_numbers = #tpu.dot_dimension_numbers<[1], [0], [0], [1], [0, 0, 1, 1], [], []>} : vector<8x8xf32>, vector<8x32xf32>, vector<8x32xf32> -> vector<8x32xf32>
    %36 = arith.addf %34, %35 : vector<8x32xf32>
    %c0_31 = arith.constant 0 : index
    %c0_32 = arith.constant 0 : index
    %37 = vector.load %arg11[%c0_31, %c0_32] : memref<8x32xf32, #tpu.memory_space<vmem>>, vector<8x32xf32>
    tpu.vector_store %arg11[%c0_31, %c0_32], %36 {strides = array<i32>} : memref<8x32xf32, #tpu.memory_space<vmem>>, vector<8x32xf32>,
    %c3_i32 = arith.constant 3 : i32
    %38 = arith.cmpi eq, %arg1, %c3_i32 : i32
    %39 = arith.extui %38 : i1 to i32
    %c0_i32_33 = arith.constant 0 : i32
    %40 = arith.cmpi ne, %39, %c0_i32_33 : i32
    scf.if %40 {
      %c0_34 = arith.constant 0 : index
      %c0_35 = arith.constant 0 : index
      %41 = vector.load %arg11[%c0_34, %c0_35] : memref<8x32xf32, #tpu.memory_space<vmem>>, vector<8x32xf32>
      %c0_36 = arith.constant 0 : index
      %c0_37 = arith.constant 0 : index
      %42 = vector.load %arg9[%c0_36, %c0_37] : memref<1x32xf32, #tpu.memory_space<vmem>>, vector<1x32xf32>
      %43 = vector.broadcast %42 : vector<1x32xf32> to vector<8x32xf32>
      %44 = arith.addf %41, %43 : vector<8x32xf32>
      %c0_38 = arith.constant 0 : index
      %c0_39 = arith.constant 0 : index
      %c0_40 = arith.constant 0 : index
      %45 = vector.load %arg10[%c0_38, %c0_39, %c0_40] : memref<1x8x32xf32, #tpu.memory_space<vmem>>, vector<1x8x32xf32>
      %46 = vector.shape_cast %45 : vector<1x8x32xf32> to vector<8x32xf32>
      %47 = vector.shape_cast %44 : vector<8x32xf32> to vector<1x8x32xf32>
      tpu.vector_store %arg10[%c0_38, %c0_39, %c0_40], %47 {strides = array<i32>} : memref<1x8x32xf32, #tpu.memory_space<vmem>>, vector<1x8x32xf32>,
    } else {
    }
    return
  }
  func.func @transform_0(%arg0: i32, %arg1: i32) -> (i32, i32, i32) {
    %c0_i32 = arith.constant 0 : i32
    %c0_i32_0 = arith.constant 0 : i32
    %c0_i32_1 = arith.constant 0 : i32
    return %arg0, %c0_i32, %c0_i32_0 : i32, i32, i32
  }
  func.func @transform_1(%arg0: i32, %arg1: i32) -> (i32, i32, i32) {
    %c0_i32 = arith.constant 0 : i32
    %c0_i32_0 = arith.constant 0 : i32
    %c0_i32_1 = arith.constant 0 : i32
    return %arg0, %c0_i32, %c0_i32_0 : i32, i32, i32
  }
  func.func @transform_2(%arg0: i32, %arg1: i32) -> (i32, i32, i32) {
    %c0_i32 = arith.constant 0 : i32
    %c0_i32_0 = arith.constant 0 : i32
    %c0_i32_1 = arith.constant 0 : i32
    return %arg0, %c0_i32, %c0_i32_0 : i32, i32, i32
  }
  func.func @transform_3(%arg0: i32, %arg1: i32) -> (i32, i32, i32) {
    %c0_i32 = arith.constant 0 : i32
    %c0_i32_0 = arith.constant 0 : i32
    %c0_i32_1 = arith.constant 0 : i32
    return %arg1, %c0_i32, %c0_i32_0 : i32, i32, i32
  }
  func.func @transform_4(%arg0: i32, %arg1: i32) -> (i32, i32, i32) {
    %c0_i32 = arith.constant 0 : i32
    %c0_i32_0 = arith.constant 0 : i32
    %c0_i32_1 = arith.constant 0 : i32
    return %arg1, %c0_i32, %c0_i32_0 : i32, i32, i32
  }
  func.func @transform_5(%arg0: i32, %arg1: i32) -> (i32, i32, i32) {
    %c0_i32 = arith.constant 0 : i32
    %c0_i32_0 = arith.constant 0 : i32
    %c0_i32_1 = arith.constant 0 : i32
    return %arg1, %c0_i32, %c0_i32_0 : i32, i32, i32
  }
  func.func @transform_6(%arg0: i32, %arg1: i32) -> (i32, i32, i32) {
    %c0_i32 = arith.constant 0 : i32
    %c0_i32_0 = arith.constant 0 : i32
    %c0_i32_1 = arith.constant 0 : i32
    return %arg1, %c0_i32, %c0_i32_0 : i32, i32, i32
  }
  func.func @transform_7(%arg0: i32, %arg1: i32) -> (i32, i32) {
    %c0_i32 = arith.constant 0 : i32
    %c0_i32_0 = arith.constant 0 : i32
    %c0_i32_1 = arith.constant 0 : i32
    return %c0_i32, %c0_i32_0 : i32, i32
  }
  func.func @transform_8(%arg0: i32, %arg1: i32) -> (i32, i32, i32) {
    %c0_i32 = arith.constant 0 : i32
    %c0_i32_0 = arith.constant 0 : i32
    %c0_i32_1 = arith.constant 0 : i32
    return %arg0, %c0_i32, %c0_i32_0 : i32, i32, i32
  }
}

</mosaic_0001>

<bundles_post_ra>
// kernel: tpu_custom_call.1
= control target key start
LH: loop header
LB: loop body
LE: loop exit
PB: predicated region body
PF: predicated region fallthrough
CT: control target
= control target key end

     0   :  { %s1627_s0 = inlined_call_operand.vmem [shape: f32[2,8,32], index: 0, kind: input, shape index: {}]   ;;  %s1628_s1 = inlined_call_operand.vmem [shape: f32[2,8,32], index: 1, kind: input, shape index: {}]   ;;  %s1629_s2 = inlined_call_operand.vmem [shape: f32[2,8,32], index: 2, kind: input, shape index: {}]   ;;  %s1630_s3 = inlined_call_operand.vmem [shape: f32[4,32,8], index: 3, kind: input, shape index: {}]   ;;  %s1631_s4 = inlined_call_operand.vmem [shape: f32[4,32,8], index: 4, kind: input, shape index: {}]   ;;  %s1632_s5 = inlined_call_operand.vmem [shape: f32[4,32,8], index: 5, kind: input, shape index: {}]   ;;  %s1633_s6 = inlined_call_operand.vmem [shape: f32[4,8,32], index: 6, kind: input, shape index: {}]   ;;  %s1634_s7 = inlined_call_operand.vmem [shape: f32[1,32], index: 7, kind: input, shape index: {}]   ;;  %s1635_s8 = inlined_call_operand.hbm [shape: f32[2,8,32], index: 8, kind: output, shape index: {}]  }
   0x1   :  { %1646 = sst [smem:[#allocation15_spill]] %s1635_s8 }
   0x2   :  { %13 = vsyncpa [#allocation4], 0 }
   0x3   :  { %15 = vsyncpa [#allocation4 + $0x1], 0  ;;  %s1419_s27 = smov 0   ;;  %s1421_s28 = smov 0  }
   0x4   :  { %s1423_s29 = smov 0   ;;  %s1425_s30 = smov 0  }
   0x5   :  { %s1427_s9 = smov 0   ;;  %s1429_s10 = smov 0  }
   0x6   :  { %s1431_s11 = smov 0   ;;  %s1433_s12 = smov 0  }
   0x7 LB: > { %1647 = sst [smem:[#allocation6_spill]] %s1339_s27  ;;  %s1074_s13 = sadd.s32 4294967295, %s1367_s12   ;;  %s1367_s12 = sphi %s1433_s12, %s21_s12   ;;  %s1363_s11 = sphi %s1431_s11, %s1671_s11   ;;  %s1359_s10 = sphi %s1429_s10, %s1670_s10   ;;  %s1355_s9 = sphi %s1427_s9, %s1669_s9   ;;  %s1351_s30 = sphi %s1425_s30, %s1674_s30   ;;  %s1347_s29 = sphi %s1423_s29, %s1667_s29   ;;  %s1343_s28 = sphi %s1421_s28, %s1673_s28   ;;  %s1339_s27 = sphi %s1419_s27, %s1672_s27  }
   0x8   : > { %1648 = sst [smem:[#allocation7_spill]] %s1347_s29  ;;  %s1075_s14 = sadd.s32 4294967294, %s1367_s12  }
   0x9   : > { %1649 = sst [smem:[#allocation8_spill]] %s1359_s10  ;;  %s30_s15 = sadd.s32 1, %s1359_s10 }
   0xa   : > { %1650 = sst [smem:[#allocation9_spill]] %s1363_s11  ;;  %p31_p0 = scmp.ge.s32.totalorder %s30_s15, 4 }
   0xb   : > { %1651 = sst [smem:[#allocation10_spill]] %s1367_s12  ;;  %s33_s16 = sadd.s32 1, %s1363_s11 }
   0xc   : > { %p253_p1 = scmp.ne.s32.totalorder %s1347_s29, %s1343_s28  ;;  %p254_p2 = scmp.eq.s32.totalorder %s1074_s13, 7 }
   0xd   : > { %s1676_s15 = smov (%p31_p0, %s30_s15), 0  ;;  %s1678_s16 = smov (!%p31_p0, %s33_s16), %s1363_s11 }
   0xe   : > { %1652 = sst [smem:[#allocation11_spill]] %s1676_s15  ;;  %p1468_p3 = por %p254_p2, %p253_p1 }
   0xf   : > { %p259_p4 = scmp.ne.s32.totalorder %s1343_s28, %s1339_s27  ;;  %p35_p5 = scmp.ge.s32.totalorder %s1678_s16, 2 }
  0x10   : > { %p260_p6 = scmp.eq.s32.totalorder %s1075_s14, 7  ;;  %p1078_p7 = scmp.ge.s32.totalorder %s1367_s12, 1 }
  0x11   : > { %p333_p8 = scmp.lt.s32.totalorder %s1367_s12, 9  ;;  %s1680_s16 = smov (%p35_p5, %s1678_s16), 0 }
  0x12   : > { %1654 = sst [smem:[#allocation12_spill]] %s1680_s16  ;;  %p1478_p9 = por %p260_p6, %p259_p4 }
  0x13   : > { %p334_p10 = pnand %p1078_p7, %p333_p8  ;;  %s240_s19 = ssub.s32 %s1363_s11, %s1680_s16 }
  0x14   : > { %s1655_s18 = scalar_select %p1478_p9, 1, 0 }
  0x15   : > { %s243_s20 = sadd.s32 1, %s1347_s29  ;;  %p241_p11 = scmp.eq.s32.totalorder %s240_s19, 0 }
  0x16   : > { %1656 = sst [smem:[#allocation13_spill]] %s1655_s18  ;;  %337 = sbr.rel (%p334_p10) target bundleno = 1255 (0x4e7), region = 52 }
  0x17   : > { %s1486_s21 = scalar_select %p241_p11, %s1347_s29, %s243_s20  }
  0x18   : > { %s1638_s22 = sand.u32 (!%p334_p10), 1, %s1343_s28   ;;  %p393_p12 = scmp.lt.s32.totalorder (!%p334_p10), %s1355_s9, 1 }
  0x19   : > { %1657 = sst [smem:[#allocation14_spill]] %s1486_s21  ;;  %s1492_s23 = sshll.u32 (!%p334_p10), %s1638_s22, 3 }
  0x1a   : > { %p405_p13 = scmp.lt.s32.totalorder (!%p334_p10), %s1351_s30, 3  ;;  %s392_s22 = scalar_lea.vmem (!%p334_p10), [#allocation3], %s1492_s23 }
  0x1b   : > { %p1090_p0 = scmp.ne.s32.totalorder (!%p334_p10), %s1351_s30, 0 }
  0x1d   : > { %s394_s24 = scalar_select %p393_p12, %s1355_s9, 1 }
  0x1e   : > { %s406_s25 = scalar_select %p405_p13, %s1351_s30, 3 }
  0x1f   : > { %s1497_s26 = sshll.u32 %s394_s24, 3  ;;  %427 = sbr.rel (%p1090_p0) target bundleno = 38 (0x26), region = 56  ;;  %vm428_vm0 = vcmask (!%p1090_p0), 261120   ;;  %v1369_v0 = vmov (!%p1090_p0), 0.0  }
  0x20   : > { %s404_s10 = scalar_lea.vmem %s1629_s2, %s1497_s26  ;;  %s1104_s21 = sshll.u32 %s406_s25, 5  ;;  %429 = vst.msk [vmem:[#allocation2] sm:$0xff] (!%p1090_p0), %vm428_vm0, %v1369_v0 }
  0x21   : > { %s409_s24 = scalar_lea.vmem %s1630_s3, %s1104_s21  ;;  %s414_s13 = scalar_lea.vmem %s1631_s4, %s1104_s21 }
  0x22   : > { %s1520_s19 = scalar_lea.vmem %s1632_s5, %s1104_s21  ;;  %s1089_s16 = sshll.u32 %s406_s25, 3 }
  0x23   : > { %s1525_s11 = scalar_lea.vmem %s1633_s6, %s1089_s16 }
  0x26 PF: > { %v437_v1 = vld [vmem:[%s414_s13] sm:$0xff]  ;;  %v438_v2 = vld [vmem:[%s414_s13 + $0x8] sm:$0xff]  ;;  %v1370_v4 = vmov 0.0|0.0   ;;  %v439_v7 = vld [vmem:[%s414_s13 + $0x10] sm:$0xff]  ;;  %vm1371_vm1 = vmmov 0   ;;  %v1372_v10 = vmov 0.0   ;;  %s1658_s29 = scalar_lea.vmem %s1628_s1, %s1497_s26  ;;  %s1659_s18 = scalar_lea.vmem %s1627_s0, %s1497_s26 }
  0x27   : > { %v433_v3 = vld [vmem:[%s409_s24] sm:$0xff]  ;;  %1182 = vmatprep.subr.bf16.mxu1 %v1370_v4  ;;  %v1183_v5 = vpack.c.bf16 %v438_v2, %v437_v1  ;;  %1176 = vmatprep.subr.bf16.mxu0 %v1370_v4  ;;  %v434_v6 = vld [vmem:[%s409_s24 + $0x8] sm:$0xff]  ;;  %v440_v8 = vld [vmem:[%s414_s13 + $0x18] sm:$0xff]  ;;  %vm446_vm2 = vcmask 261120   ;;  %vm666_vm3 = vcmask 64512   ;;  %p1098_p1 = scmp.ne.s32.totalorder %s1351_s30, 3 }
  0x28   : > { %v1177_v9 = vpack.c.bf16 %v434_v6, %v433_v3  ;;  %1147 = vmatprep.mubr.msk.f32.mxu1 %vm1371_vm1, %v1372_v10  ;;  %v435_v11 = vld [vmem:[%s409_s24 + $0x10] sm:$0xff]  ;;  %v436_v12 = vld [vmem:[%s409_s24 + $0x18] sm:$0xff]  ;;  %1136 = vmatprep.mubr.msk.f32.mxu0 %vm1371_vm1, %v1372_v10  ;;  %v1186_v13 = vpack.c.bf16 %v440_v8, %v439_v7  ;;  %v431_v15 = vld [vmem:[%s1658_s29] sm:$0xff] }
  0x29   : > { %1184 = vmatpush3.bf16.msra.mxu1 %v1183_v5  ;;  %v1180_v14 = vpack.c.bf16 %v436_v12, %v435_v11  ;;  %v430_v16 = vld [vmem:[%s1659_s18] sm:$0xff]  ;;  %v442_v22 = vld [vmem:[%s1520_s19 + $0x8] sm:$0xff]  ;;  %v443_v23 = vld [vmem:[%s1520_s19 + $0x10] sm:$0xff] }
  0x2a   : > { %1178 = vmatpush3.bf16.msra.mxu0 %v1177_v9  ;;  %1185 = vmatprep.subr.bf16.mxu1 %v1370_v4  ;;  %v441_v21 = vld [vmem:[%s1520_s19] sm:$0xff]  ;;  %v444_v25 = vld [vmem:[%s1520_s19 + $0x18] sm:$0xff] }
  0x2b   : > { %1179 = vmatprep.subr.bf16.mxu0 %v1370_v4  ;;  %v1189_v24 = vpack.c.bf16 %v442_v22, %v441_v21  ;;  %v1192_v26 = vpack.c.bf16 %v444_v25, %v443_v23  ;;  %v432_v27 = vld [vmem:[%s404_s10] sm:$0xff] }
  0x2c   : > { %v445_v39 = vld [vmem:[%s1525_s11] sm:$0xff] }
  0x2d   : > { %1187 = vmatpush3.bf16.msra.mxu1 %v1186_v13  ;;  %v828_v45 = vld [vmem:[#allocation2] sm:$0xff] }
  0x2e   : > { %1181 = vmatpush3.bf16.msra.mxu0 %v1180_v14  ;;  %1161 = vmatprep.subr.mxu1 %v1372_v10  ;;  %v1099_v50 = vld [vmem:[%s1634_s7] ss:$0 sm:$0xff] (!%p1098_p1) }
  0x2f   : > { %1188 = vmatprep.subr.bf16.mxu0 %v1370_v4 }
  0x30   : > { %1148 = vmatmul.mubr.msk.f32.vlgmr.msra.gmra.mrb[0].mxu1 %vm446_vm2, %v431_v15 }
  0x31   : > { %1137 = vmatmul.mubr.msk.f32.vlgmr.msra.gmra.mrb[0].mxu0 %vm446_vm2, %v430_v16  ;;  %1163 = vmatprep.mubr.msk.f32.mxu1 %vm1371_vm1, %v1372_v10 }
  0x32   : > { %1158 = vmatprep.mubr.msk.f32.mxu0 %vm1371_vm1, %v1372_v10  ;;  %1190 = vmatpush3.bf16.msra.mxu0 %v1189_v24 }
  0x33   : > { %1191 = vmatprep.subr.bf16.mxu0 %v1370_v4 }
  0x36   : > { %1193 = vmatpush3.bf16.msra.mxu0 %v1192_v26 }
  0x37   : > { %1171 = vmatprep.subr.mxu0 %v1372_v10 }
  0x39   : > { %1159 = vmatmul.mubr.msk.f32.vlgmr.msra.gmra.mrb[2].mxu0 %vm446_vm2, %v432_v27 }
  0x3a   : > { %1173 = vmatprep.mubr.msk.f32.mxu0 %vm1371_vm1, %v1372_v10  ;;  %1172 = vmatpush3.msra.mxu0 %v445_v39 }
 0x103   : > { %v589_v17 = vpop.f32.mrb[0].mxu1 }
 0x104   : > { %v1149_v18 = vpop.f32.mrb[1].mxu1  ;;  %1162 = vmatpush3.xpose.msk.msra.mxu1 %vm666_vm3, %v589_v17  ;;  %v516_v19 = vpop.f32.mrb[0].mxu0 }
 0x105   : > { %v1138_v20 = vpop.f32.mrb[1].mxu0  ;;  %1166 = vmatprep.subr.mxu1 %v1372_v10 }
 0x107   : > { %1164 = vmatmul.mubr.msk.f32.vlgmr.msra.gmra.mrb[2].mxu1 %vm666_vm3, %v516_v19 }
 0x108   : > { %1168 = vmatprep.mubr.msk.f32.mxu1 %vm1371_vm1, %v1372_v10 }
 0x10c   : > { %v662_v37 = vpop.f32.mrb[2].mxu0 }
 0x10d   : > { %v1160_v38 = vpop.f32.mrb[3].mxu0  ;;  %1167 = vmatpush3.msra.mxu1 %v662_v37 }
 0x1da   : > { %v739_v28 = vpop.f32.mrb[2].mxu1 }
 0x1db   : > { %v743_v29 = vmul.f32 0.35355338, %v739_v28  ;;  %v1165_v30 = vpop.f32.mrb[3].mxu1 }
 0x1dd   : > { %v744_v31 = vsel %vm666_vm3, %v743_v29, -inf }
 0x1de   : > { %745 = vmax.xlane.f32.xlu0 %v744_v31 }
 0x26b   : > { %v746_v32 = vpop.xlane.xlu0 %745 }
 0x26c   : > { %v747_v33 = vsub.f32 %v743_v29, %v746_v32 }
 0x26e   : > { %v748_v34 = vmul.f32 1.442695, %v747_v33 }
 0x270   : > { %1269 = vpow2.f32 %v748_v34 }
 0x27a   : > { %v1270_v35 = vpop.eup %1269 }
 0x27b   : > { %v750_v36 = vsel %vm666_vm3, %v1270_v35, 0.0 }
 0x27c   : > { %751 = vadd.xlane.f32.xlu0 %v750_v36 }
 0x309   : > { %v752_v40 = vpop.xlane.xlu0 %751 }
 0x30a   : > { %1271 = vrcp.f32 %v752_v40 }
 0x314   : > { %v1272_v41 = vpop.eup %1271 }
 0x315   : > { %v754_v42 = vmul.f32 %v1272_v41, %v1270_v35 }
 0x317   : > { %1169 = vmatmul.mubr.msk.f32.vlgmr.msra.gmra.mrb[4].mxu1 %vm666_vm3, %v754_v42 }
 0x3ea   : > { %v824_v43 = vpop.f32.mrb[4].mxu1 }
 0x3eb   : > { %v1170_v44 = vpop.f32.mrb[5].mxu1  ;;  %1174 = vmatmul.mubr.msk.f32.vlgmr.msra.gmra.mrb[4].mxu0 %vm666_vm3, %v824_v43 }
 0x4bb   : > { %907 = sbr.rel (%p1098_p1) target bundleno = 1228 (0x4cc), region = 60 }
 0x4be   : > { %v898_v46 = vpop.f32.mrb[4].mxu0 }
 0x4bf   : > { %v902_v47 = vadd.f32 %v898_v46, %v828_v45  ;;  %v1175_v48 = vpop.f32.mrb[5].mxu0 }
 0x4c1   : > { %903 = vst.msk [vmem:[#allocation2] sm:$0xff] %vm446_vm2, %v902_v47 }
 0x4c8   : > { %v908_v49 = vld [vmem:[#allocation2] sm:$0xff] }
 0x4c9   : > { %v916_v51 = vadd.f32 %v1099_v50, %v908_v49 }
 0x4cb   : > { %917 = vst.msk [vmem:[%s392_s22] sm:$0xff] %vm446_vm2, %v916_v51 }
 0x4cc PF: > { %s1101_s19 = sshll.u32 %s1355_s9, 7  ;;  %s1660_s30 = sld [smem:[#allocation15_spill]] }
 0x4cd   : > { %s932_s20 = sshll.u32 %s392_s22, 4  ;;  %s1662_s11 = sand.u32 1, %s1343_s28   ;;  %s933_s20 = int_to_ptr.vmem [resolvable:$true] %s932_s20 }
 0x4ce   : > { %s919_s8 = scalar_lea.sflag [#allocation4], %s1662_s11  ;;  %s1273_s27 = scalar_lea.vmem %s933_s20, 128 }
 0x4cf   : > { %p1274_p2 = scmp.ne.s32.totalorder %s933_s20, %s1273_s27  ;;  %s1373_s29 = smov [#allocation3]  }
 0x4d0   : > { %s1277_s12 = sshll.u32 %s1373_s29, 4  ;;  %s1278_s12 = int_to_ptr.vmem [resolvable:$false] %s1277_s12 }
 0x4d1   : > { %p1275_p4 = pnand %p1274_p2, %p1468_p3  ;;  %s1279_s15 = scalar_lea.vmem %s1278_s12, 256 }
 0x4d2   : > { %s1661_s14 = smov %s1660_s30  ;;  %s1576_s16 = scalar_lea.hbm %s1660_s30, %s1101_s19 }
 0x4d3   : > { %p1276_p5 = pneg %p1275_p4  ;;  %p1280_p6 = scmp.lt.s32.totalorder %s933_s20, %s1278_s12 }
 0x4d4   : > { %p1281_p7 = scmp.lt.s32.totalorder %s1279_s15, %s1273_s27 }
 0x4d6   : > { %p1282_p8 = por %p1281_p7, %p1280_p6 }
 0x4d8   : > { %p1283_p10 = pnand %p1282_p8, %p1276_p5 }
 0x4da   : > { %1286 = shalt.err (!%p1283_p10)
}
 0x4db   : > { %s1287_s9 = scalar_lea.hbm %s1576_s16, 128  ;;  %s1291_s18 = scalar_lea.hbm %s1661_s14, 256 }
 0x4dc   : > { %p1288_p11 = scmp.ne.s32.totalorder %s1576_s16, %s1287_s9  ;;  %p1292_p0 = scmp.lt.u32.totalorder %s1576_s16, %s1661_s14 }
 0x4dd   : > { %p1293_p1 = scmp.lt.u32.totalorder %s1291_s18, %s1287_s9  ;;  %p1295_p4 = scmp.lt.u32.totalorder %s1287_s9, %s1576_s16 }
 0x4de   : > { %p1289_p12 = pnand %p1288_p11, %p1468_p3 }
 0x4df   : > { %p1294_p2 = por %p1293_p1, %p1292_p0 }
 0x4e0   : > { %p1290_p13 = pneg %p1289_p12 }
 0x4e1   : > { %p1296_p5 = por %p1295_p4, %p1294_p2 }
 0x4e3   : > { %p1297_p6 = pnand %p1296_p5, %p1290_p13 }
 0x4e5   : > { %1300 = shalt.err (!%p1297_p6)
}
 0x4e6   : > { %1194 = dma.vmem_to_hbm [thread:$0]  (%p1468_p3), %s933_s20, 128, %s1576_s16, %s919_s8  }
 0x4e7 PF: > { %s1663_s10 = sld [smem:[#allocation10_spill]]  ;;  %s1664_s26 = sld [smem:[#allocation6_spill]] }
 0x4ed   : > { %p1200_p7 = scmp.ge.s32.totalorder %s1663_s10, 2  ;;  %s944_s24 = sand.u32 1, %s1664_s26  }
 0x4ee   : > { %s945_s13 = scalar_lea.sflag [#allocation4], %s944_s24 }
 0x4ef   : > { %p1197_p8 = pnand %p1200_p7, %p1478_p9 }
 0x4f1   : > { %1334 = dma.done.wait (!%p1197_p8), %s945_s13, 128  }
 0x4f2   : > { %1336 = vsyncadd (!%p1197_p8), %s945_s13, 4294967168  ;;  %s21_s12 = sadd.s32 1, %s1663_s10   ;;  %s1666_s30 = sld [smem:[#allocation7_spill]] }
 0x4f3   : > { %p18_p10 = scmp.ge.s32.totalorder %s21_s12, 10   ;;  %s1667_s29 = sld [smem:[#allocation14_spill]] }
 0x4f4   : > { %s1668_s17 = sld [smem:[#allocation8_spill]]  ;;  %s1669_s9 = sld [smem:[#allocation9_spill]] }
 0x4f5   : > { %s1670_s10 = sld [smem:[#allocation11_spill]]  ;;  %s1671_s11 = sld [smem:[#allocation12_spill]] }
 0x4f6   : > { %s1672_s27 = smov %s1343_s28  ;;  %20 = sbr.rel (!%p18_p10) target bundleno = 7 (0x7), region = 113 }
 0x4f8   : > { %s1673_s28 = smov %s1666_s30 }
 0x4fa   : > { %s1674_s30 = smov %s1668_s17 }
 0x4fd   :  { %950 = vsyncpa [#allocation4], 1 }
 0x4fe   :  { %952 = vsyncpa [#allocation4 + $0x1], 1 }

</bundles_post_ra>
